<compile_context>
chip_gen: v7x
topology: tpu7x:2x2x1
jax: 0.10.0
libtpu: 0.0.40
codegen_flags: <defaults>
</compile_context>

<pallas_src>
import functools

import jax
import jax.numpy as jnp
from jax.experimental import pallas as pl
from jax.experimental.pallas import tpu as pltpu

EPS = 1e-9


# ----------------------------------------------------------------------------
# Pallas kernel: one (TH, TW) tile of the sampling plane for one batch elem.
#   warped_x = a00 + a10*gx + a20*gy + sum_j Wx_j * U_j
#   warped_y = a01 + a11*gx + a21*gy + sum_j Wy_j * U_j
#   U_j      = d2_j * log(d2_j + eps),  d2_j = (gx - Xx_j)^2 + (gy - Xy_j)^2
# All coefficients are scalars in SMEM; gx/gy are generated in-kernel.
# ----------------------------------------------------------------------------
def _tps_warp_kernel(coef_ref, out_ref, *, k, stride, sx, sy):
    b = pl.program_id(0)          # batch
    i = pl.program_id(1)          # tile row (h / sublane axis)
    j = pl.program_id(2)          # tile col (w / lane axis)

    th = out_ref.shape[2]
    tw = out_ref.shape[3]

    base = b * stride             # offset of this batch's coefficients in SMEM

    # --- analytic sampling grid for this tile (lane-dense, no HBM read) -----
    row = jax.lax.broadcasted_iota(jnp.int32, (th, tw), 0).astype(jnp.float32)
    col = jax.lax.broadcasted_iota(jnp.int32, (th, tw), 1).astype(jnp.float32)
    off_y = (i * th).astype(jnp.float32) * sy - 1.0
    off_x = (j * tw).astype(jnp.float32) * sx - 1.0
    gy = row * sy + off_y         # coordinate 1: linspace(-1, 1, h) along h
    gx = col * sx + off_x         # coordinate 0: linspace(-1, 1, w) along w

    # --- affine part: [1, gx, gy] @ A  (scalars from SMEM, VPU only) --------
    a00 = coef_ref[base + 4 * k + 0]
    a10 = coef_ref[base + 4 * k + 1]
    a20 = coef_ref[base + 4 * k + 2]
    a01 = coef_ref[base + 4 * k + 3]
    a11 = coef_ref[base + 4 * k + 4]
    a21 = coef_ref[base + 4 * k + 5]

    acc_x = a00 + a10 * gx + a20 * gy
    acc_y = a01 + a11 * gx + a21 * gy

    # --- radial-basis part: unrolled VPU sum over the k control points ------
    for c in range(k):
        cx = coef_ref[base + c]            # control point x
        cy = coef_ref[base + k + c]        # control point y
        wx = coef_ref[base + 2 * k + c]    # W[:, c, 0]
        wy = coef_ref[base + 3 * k + c]    # W[:, c, 1]
        dx = gx - cx
        dy = gy - cy
        d2 = dx * dx + dy * dy
        u = d2 * jnp.log(d2 + EPS)         # EUP log + VPU mul
        acc_x = acc_x + wx * u
        acc_y = acc_y + wy * u

    # One full-width store per coordinate plane per tile.
    out_ref[0, 0, :, :] = acc_x
    out_ref[0, 1, :, :] = acc_y


def _pick_tile(padded, unit, cap):
    """Largest multiple of `unit` that divides `padded` and is <= cap."""
    best = unit
    t = unit
    limit = min(padded, cap)
    while t <= limit:
        if padded % t == 0:
            best = t
        t += unit
    return best


def _tps_warp(coef, n, k, w, h):
    """coef: flat (n*(4k+6),) per-batch coefficients -> planes (n, 2, Hp, Wp)."""
    stride = 4 * k + 6
    hp = -(-h // 8) * 8            # pad h to multiple of 8   (sublanes)
    wp = -(-w // 128) * 128        # pad w to multiple of 128 (lanes)
    th = _pick_tile(hp, 8, 256)
    tw = _pick_tile(wp, 128, 1024)
    sx = 2.0 / (w - 1) if w > 1 else 0.0
    sy = 2.0 / (h - 1) if h > 1 else 0.0

    kernel = functools.partial(
        _tps_warp_kernel, k=k, stride=stride, sx=sx, sy=sy)

    return pl.pallas_call(
        kernel,
        out_shape=jax.ShapeDtypeStruct((n, 2, hp, wp), jnp.float32),
        grid=(n, hp // th, wp // tw),
        in_specs=[
            # All per-batch TPS coefficients live in SMEM (tiny, scalar reads).
            pl.BlockSpec(memory_space=pltpu.MemorySpace.SMEM),
        ],
        out_specs=pl.BlockSpec((1, 2, th, tw), lambda b, i, j: (b, 0, i, j)),
        compiler_params=pltpu.CompilerParams(
            dimension_semantics=("parallel", "parallel", "parallel")),
    )(coef)


# ----------------------------------------------------------------------------
# Glue: sampling grid (reference only) + the small TPS linear solve.
# ----------------------------------------------------------------------------
def _make_grid(w, h):
    xs = jnp.linspace(-1.0, 1.0, w, dtype=jnp.float32)      # -> coord 0
    ys = jnp.linspace(-1.0, 1.0, h, dtype=jnp.float32)      # -> coord 1
    gx = jnp.broadcast_to(xs[None, :], (h, w))
    gy = jnp.broadcast_to(ys[:, None], (h, w))
    return jnp.stack([gx, gy], axis=-1).reshape(h * w, 2)    # (HW, 2)


def _solve_tps(X, Y):
    """Solve L Q = Z for the TPS weights. X, Y: (n, k, 2) -> W (n,k,2), A (n,3,2)."""
    # TODO(synk): the (k+3)x(k+3) batched solve stays in plain JAX (tiny glue).
    n, k, _ = X.shape
    diff = X[:, :, None, :] - X[:, None, :, :]
    D2 = jnp.sum(diff * diff, axis=-1)                       # (n, k, k)
    K = D2 * jnp.log(D2 + EPS)
    P = jnp.concatenate([jnp.ones((n, k, 1), jnp.float32), X], axis=-1)  # (n,k,3)
    L = jnp.zeros((n, k + 3, k + 3), jnp.float32)
    L = L.at[:, :k, :k].set(K)
    L = L.at[:, :k, k:].set(P)
    L = L.at[:, k:, :k].set(jnp.transpose(P, (0, 2, 1)))
    Z = jnp.zeros((n, k + 3, 2), jnp.float32).at[:, :k, :].set(Y)
    Q = jnp.linalg.solve(L, Z)                               # (n, k+3, 2)
    return Q[:, :k], Q[:, k:]


@functools.partial(jax.jit, static_argnums=(2, 3))
def tps_forward(X, Y, w, h):
    n, k, _ = X.shape
    Wmat, Amat = _solve_tps(X, Y)                            # (n,k,2), (n,3,2)
    # Consolidate all per-batch coefficients into one flat SMEM vector:
    # [Xx(k), Xy(k), Wx(k), Wy(k), a00,a10,a20, a01,a11,a21] per batch.
    coef = jnp.concatenate(
        [X[:, :, 0], X[:, :, 1],
         Wmat[:, :, 0], Wmat[:, :, 1],
         Amat[:, :, 0], Amat[:, :, 1]], axis=1).astype(jnp.float32).reshape(-1)
    planes = _tps_warp(coef, n, k, w, h)                     # (n, 2, Hp, Wp)
    planes = planes[:, :, :h, :w]                            # drop tile padding
    return jnp.transpose(planes, (0, 2, 3, 1))               # (n, h, w, 2)


# ----------------------------------------------------------------------------
# Pure-JAX reference (mirrors the PyTorch forward exactly) for validation.
# ----------------------------------------------------------------------------
def tps_reference(X, Y, w, h):
    n, k, _ = X.shape
    grid = _make_grid(w, h)[None]                            # (1, HW, 2)
    Wmat, Amat = _solve_tps(X, Y)
    diff = grid[:, :, None, :] - X[:, None, :, :]            # (n, HW, k, 2)
    D2 = jnp.sum(diff * diff, axis=-1)
    U = D2 * jnp.log(D2 + EPS)
    Pg = jnp.concatenate(
        [jnp.ones((1, w * h, 1), jnp.float32), grid], axis=-1)  # (1, HW, 3)
    out = jnp.matmul(Pg, Amat) + jnp.matmul(U, Wmat)
    return out.reshape(-1, h, w, 2)


if __name__ == "__main__":
    n, k = 2, 4          # batch of 2 samples, 4 control points each
    h, w = 16, 16        # output sampling grid

    key = jax.random.PRNGKey(0)
    kx, ky = jax.random.split(key)
    X = jax.random.uniform(kx, (n, k, 2), jnp.float32, minval=-1.0, maxval=1.0)
    Y = jax.random.uniform(ky, (n, k, 2), jnp.float32, minval=-1.0, maxval=1.0)

    out = tps_forward(X, Y, w, h)
    out = jax.block_until_ready(out)

    ref = tps_reference(X, Y, w, h)
    assert out.shape == (n, h, w, 2), out.shape
    assert jnp.allclose(out, ref, rtol=1e-3, atol=1e-3), (
        float(jnp.max(jnp.abs(out - ref))))

    print("KERNEL_OK")
</pallas_src>

<mosaic_0001>
module attributes {stable_mosaic.version = 11 : i64} {
  func.func @_tps_warp_kernel(%arg0: i32, %arg1: i32, %arg2: i32, %arg3: memref<44xf32, #tpu.memory_space<smem>>, %arg4: memref<1x2x16x128xf32, #tpu.memory_space<vmem>>) attributes {dimension_semantics = [#tpu.dimension_semantics<parallel>, #tpu.dimension_semantics<parallel>, #tpu.dimension_semantics<parallel>], iteration_bounds = array<i64: 2, 1, 1>, scalar_prefetch = 0 : i64, scratch_operands = 0 : i64, tpu.core_type = #tpu.core_type<tc>, window_params = [{transform_indices = @transform_0, window_bounds = array<i64: 44>}, {transform_indices = @transform_1, window_bounds = array<i64: 1, 2, 16, 128>}]} {
    %c22_i32 = arith.constant 22 : i32
    %0 = arith.muli %arg0, %c22_i32 : i32
    %1 = tpu.iota {dimensions = array<i32: 0>} : vector<16x128xi32>
    %2 = arith.sitofp %1 : vector<16x128xi32> to vector<16x128xf32>
    %3 = tpu.iota {dimensions = array<i32: 1>} : vector<16x128xi32>
    %4 = arith.sitofp %3 : vector<16x128xi32> to vector<16x128xf32>
    %c16_i32 = arith.constant 16 : i32
    %5 = arith.muli %arg1, %c16_i32 : i32
    %6 = arith.sitofp %5 : i32 to f32
    %cst = arith.constant 0.13333334 : f32
    %7 = arith.mulf %6, %cst : f32
    %cst_0 = arith.constant 1.000000e+00 : f32
    %8 = arith.subf %7, %cst_0 : f32
    %c128_i32 = arith.constant 128 : i32
    %9 = arith.muli %arg2, %c128_i32 : i32
    %10 = arith.sitofp %9 : i32 to f32
    %cst_1 = arith.constant 0.13333334 : f32
    %11 = arith.mulf %10, %cst_1 : f32
    %cst_2 = arith.constant 1.000000e+00 : f32
    %12 = arith.subf %11, %cst_2 : f32
    %cst_3 = arith.constant 0.13333334 : f32
    %13 = vector.broadcast %cst_3 : f32 to vector<16x128xf32>
    %14 = arith.mulf %2, %13 : vector<16x128xf32>
    %15 = vector.broadcast %8 : f32 to vector<16x128xf32>
    %16 = arith.addf %14, %15 : vector<16x128xf32>
    %cst_4 = arith.constant 0.13333334 : f32
    %17 = vector.broadcast %cst_4 : f32 to vector<16x128xf32>
    %18 = arith.mulf %4, %17 : vector<16x128xf32>
    %19 = vector.broadcast %12 : f32 to vector<16x128xf32>
    %20 = arith.addf %18, %19 : vector<16x128xf32>
    %c16_i32_5 = arith.constant 16 : i32
    %21 = arith.addi %0, %c16_i32_5 : i32
    %c0_i32 = arith.constant 0 : i32
    %22 = arith.addi %21, %c0_i32 : i32
    %23 = arith.index_cast %22 : i32 to index
    %24 = memref.load %arg3[%23] : memref<44xf32, #tpu.memory_space<smem>>
    %c16_i32_6 = arith.constant 16 : i32
    %25 = arith.addi %0, %c16_i32_6 : i32
    %c1_i32 = arith.constant 1 : i32
    %26 = arith.addi %25, %c1_i32 : i32
    %27 = arith.index_cast %26 : i32 to index
    %28 = memref.load %arg3[%27] : memref<44xf32, #tpu.memory_space<smem>>
    %c16_i32_7 = arith.constant 16 : i32
    %29 = arith.addi %0, %c16_i32_7 : i32
    %c2_i32 = arith.constant 2 : i32
    %30 = arith.addi %29, %c2_i32 : i32
    %31 = arith.index_cast %30 : i32 to index
    %32 = memref.load %arg3[%31] : memref<44xf32, #tpu.memory_space<smem>>
    %c16_i32_8 = arith.constant 16 : i32
    %33 = arith.addi %0, %c16_i32_8 : i32
    %c3_i32 = arith.constant 3 : i32
    %34 = arith.addi %33, %c3_i32 : i32
    %35 = arith.index_cast %34 : i32 to index
    %36 = memref.load %arg3[%35] : memref<44xf32, #tpu.memory_space<smem>>
    %c16_i32_9 = arith.constant 16 : i32
    %37 = arith.addi %0, %c16_i32_9 : i32
    %c4_i32 = arith.constant 4 : i32
    %38 = arith.addi %37, %c4_i32 : i32
    %39 = arith.index_cast %38 : i32 to index
    %40 = memref.load %arg3[%39] : memref<44xf32, #tpu.memory_space<smem>>
    %c16_i32_10 = arith.constant 16 : i32
    %41 = arith.addi %0, %c16_i32_10 : i32
    %c5_i32 = arith.constant 5 : i32
    %42 = arith.addi %41, %c5_i32 : i32
    %43 = arith.index_cast %42 : i32 to index
    %44 = memref.load %arg3[%43] : memref<44xf32, #tpu.memory_space<smem>>
    %45 = vector.broadcast %28 : f32 to vector<16x128xf32>
    %46 = arith.mulf %45, %20 : vector<16x128xf32>
    %47 = vector.broadcast %24 : f32 to vector<16x128xf32>
    %48 = arith.addf %47, %46 : vector<16x128xf32>
    %49 = vector.broadcast %32 : f32 to vector<16x128xf32>
    %50 = arith.mulf %49, %16 : vector<16x128xf32>
    %51 = arith.addf %48, %50 : vector<16x128xf32>
    %52 = vector.broadcast %40 : f32 to vector<16x128xf32>
    %53 = arith.mulf %52, %20 : vector<16x128xf32>
    %54 = vector.broadcast %36 : f32 to vector<16x128xf32>
    %55 = arith.addf %54, %53 : vector<16x128xf32>
    %56 = vector.broadcast %44 : f32 to vector<16x128xf32>
    %57 = arith.mulf %56, %16 : vector<16x128xf32>
    %58 = arith.addf %55, %57 : vector<16x128xf32>
    %c0_i32_11 = arith.constant 0 : i32
    %59 = arith.addi %0, %c0_i32_11 : i32
    %60 = arith.index_cast %59 : i32 to index
    %61 = memref.load %arg3[%60] : memref<44xf32, #tpu.memory_space<smem>>
    %c4_i32_12 = arith.constant 4 : i32
    %62 = arith.addi %0, %c4_i32_12 : i32
    %c0_i32_13 = arith.constant 0 : i32
    %63 = arith.addi %62, %c0_i32_13 : i32
    %64 = arith.index_cast %63 : i32 to index
    %65 = memref.load %arg3[%64] : memref<44xf32, #tpu.memory_space<smem>>
    %c8_i32 = arith.constant 8 : i32
    %66 = arith.addi %0, %c8_i32 : i32
    %c0_i32_14 = arith.constant 0 : i32
    %67 = arith.addi %66, %c0_i32_14 : i32
    %68 = arith.index_cast %67 : i32 to index
    %69 = memref.load %arg3[%68] : memref<44xf32, #tpu.memory_space<smem>>
    %c12_i32 = arith.constant 12 : i32
    %70 = arith.addi %0, %c12_i32 : i32
    %c0_i32_15 = arith.constant 0 : i32
    %71 = arith.addi %70, %c0_i32_15 : i32
    %72 = arith.index_cast %71 : i32 to index
    %73 = memref.load %arg3[%72] : memref<44xf32, #tpu.memory_space<smem>>
    %74 = vector.broadcast %61 : f32 to vector<16x128xf32>
    %75 = arith.subf %20, %74 : vector<16x128xf32>
    %76 = vector.broadcast %65 : f32 to vector<16x128xf32>
    %77 = arith.subf %16, %76 : vector<16x128xf32>
    %78 = arith.mulf %75, %75 : vector<16x128xf32>
    %79 = arith.mulf %77, %77 : vector<16x128xf32>
    %80 = arith.addf %78, %79 : vector<16x128xf32>
    %cst_16 = arith.constant 9.99999971E-10 : f32
    %81 = vector.broadcast %cst_16 : f32 to vector<16x128xf32>
    %82 = arith.addf %80, %81 : vector<16x128xf32>
    %83 = math.log %82 : vector<16x128xf32>
    %84 = arith.mulf %80, %83 : vector<16x128xf32>
    %85 = vector.broadcast %69 : f32 to vector<16x128xf32>
    %86 = arith.mulf %85, %84 : vector<16x128xf32>
    %87 = arith.addf %51, %86 : vector<16x128xf32>
    %88 = vector.broadcast %73 : f32 to vector<16x128xf32>
    %89 = arith.mulf %88, %84 : vector<16x128xf32>
    %90 = arith.addf %58, %89 : vector<16x128xf32>
    %c1_i32_17 = arith.constant 1 : i32
    %91 = arith.addi %0, %c1_i32_17 : i32
    %92 = arith.index_cast %91 : i32 to index
    %93 = memref.load %arg3[%92] : memref<44xf32, #tpu.memory_space<smem>>
    %c4_i32_18 = arith.constant 4 : i32
    %94 = arith.addi %0, %c4_i32_18 : i32
    %c1_i32_19 = arith.constant 1 : i32
    %95 = arith.addi %94, %c1_i32_19 : i32
    %96 = arith.index_cast %95 : i32 to index
    %97 = memref.load %arg3[%96] : memref<44xf32, #tpu.memory_space<smem>>
    %c8_i32_20 = arith.constant 8 : i32
    %98 = arith.addi %0, %c8_i32_20 : i32
    %c1_i32_21 = arith.constant 1 : i32
    %99 = arith.addi %98, %c1_i32_21 : i32
    %100 = arith.index_cast %99 : i32 to index
    %101 = memref.load %arg3[%100] : memref<44xf32, #tpu.memory_space<smem>>
    %c12_i32_22 = arith.constant 12 : i32
    %102 = arith.addi %0, %c12_i32_22 : i32
    %c1_i32_23 = arith.constant 1 : i32
    %103 = arith.addi %102, %c1_i32_23 : i32
    %104 = arith.index_cast %103 : i32 to index
    %105 = memref.load %arg3[%104] : memref<44xf32, #tpu.memory_space<smem>>
    %106 = vector.broadcast %93 : f32 to vector<16x128xf32>
    %107 = arith.subf %20, %106 : vector<16x128xf32>
    %108 = vector.broadcast %97 : f32 to vector<16x128xf32>
    %109 = arith.subf %16, %108 : vector<16x128xf32>
    %110 = arith.mulf %107, %107 : vector<16x128xf32>
    %111 = arith.mulf %109, %109 : vector<16x128xf32>
    %112 = arith.addf %110, %111 : vector<16x128xf32>
    %cst_24 = arith.constant 9.99999971E-10 : f32
    %113 = vector.broadcast %cst_24 : f32 to vector<16x128xf32>
    %114 = arith.addf %112, %113 : vector<16x128xf32>
    %115 = math.log %114 : vector<16x128xf32>
    %116 = arith.mulf %112, %115 : vector<16x128xf32>
    %117 = vector.broadcast %101 : f32 to vector<16x128xf32>
    %118 = arith.mulf %117, %116 : vector<16x128xf32>
    %119 = arith.addf %87, %118 : vector<16x128xf32>
    %120 = vector.broadcast %105 : f32 to vector<16x128xf32>
    %121 = arith.mulf %120, %116 : vector<16x128xf32>
    %122 = arith.addf %90, %121 : vector<16x128xf32>
    %c2_i32_25 = arith.constant 2 : i32
    %123 = arith.addi %0, %c2_i32_25 : i32
    %124 = arith.index_cast %123 : i32 to index
    %125 = memref.load %arg3[%124] : memref<44xf32, #tpu.memory_space<smem>>
    %c4_i32_26 = arith.constant 4 : i32
    %126 = arith.addi %0, %c4_i32_26 : i32
    %c2_i32_27 = arith.constant 2 : i32
    %127 = arith.addi %126, %c2_i32_27 : i32
    %128 = arith.index_cast %127 : i32 to index
    %129 = memref.load %arg3[%128] : memref<44xf32, #tpu.memory_space<smem>>
    %c8_i32_28 = arith.constant 8 : i32
    %130 = arith.addi %0, %c8_i32_28 : i32
    %c2_i32_29 = arith.constant 2 : i32
    %131 = arith.addi %130, %c2_i32_29 : i32
    %132 = arith.index_cast %131 : i32 to index
    %133 = memref.load %arg3[%132] : memref<44xf32, #tpu.memory_space<smem>>
    %c12_i32_30 = arith.constant 12 : i32
    %134 = arith.addi %0, %c12_i32_30 : i32
    %c2_i32_31 = arith.constant 2 : i32
    %135 = arith.addi %134, %c2_i32_31 : i32
    %136 = arith.index_cast %135 : i32 to index
    %137 = memref.load %arg3[%136] : memref<44xf32, #tpu.memory_space<smem>>
    %138 = vector.broadcast %125 : f32 to vector<16x128xf32>
    %139 = arith.subf %20, %138 : vector<16x128xf32>
    %140 = vector.broadcast %129 : f32 to vector<16x128xf32>
    %141 = arith.subf %16, %140 : vector<16x128xf32>
    %142 = arith.mulf %139, %139 : vector<16x128xf32>
    %143 = arith.mulf %141, %141 : vector<16x128xf32>
    %144 = arith.addf %142, %143 : vector<16x128xf32>
    %cst_32 = arith.constant 9.99999971E-10 : f32
    %145 = vector.broadcast %cst_32 : f32 to vector<16x128xf32>
    %146 = arith.addf %144, %145 : vector<16x128xf32>
    %147 = math.log %146 : vector<16x128xf32>
    %148 = arith.mulf %144, %147 : vector<16x128xf32>
    %149 = vector.broadcast %133 : f32 to vector<16x128xf32>
    %150 = arith.mulf %149, %148 : vector<16x128xf32>
    %151 = arith.addf %119, %150 : vector<16x128xf32>
    %152 = vector.broadcast %137 : f32 to vector<16x128xf32>
    %153 = arith.mulf %152, %148 : vector<16x128xf32>
    %154 = arith.addf %122, %153 : vector<16x128xf32>
    %c3_i32_33 = arith.constant 3 : i32
    %155 = arith.addi %0, %c3_i32_33 : i32
    %156 = arith.index_cast %155 : i32 to index
    %157 = memref.load %arg3[%156] : memref<44xf32, #tpu.memory_space<smem>>
    %c4_i32_34 = arith.constant 4 : i32
    %158 = arith.addi %0, %c4_i32_34 : i32
    %c3_i32_35 = arith.constant 3 : i32
    %159 = arith.addi %158, %c3_i32_35 : i32
    %160 = arith.index_cast %159 : i32 to index
    %161 = memref.load %arg3[%160] : memref<44xf32, #tpu.memory_space<smem>>
    %c8_i32_36 = arith.constant 8 : i32
    %162 = arith.addi %0, %c8_i32_36 : i32
    %c3_i32_37 = arith.constant 3 : i32
    %163 = arith.addi %162, %c3_i32_37 : i32
    %164 = arith.index_cast %163 : i32 to index
    %165 = memref.load %arg3[%164] : memref<44xf32, #tpu.memory_space<smem>>
    %c12_i32_38 = arith.constant 12 : i32
    %166 = arith.addi %0, %c12_i32_38 : i32
    %c3_i32_39 = arith.constant 3 : i32
    %167 = arith.addi %166, %c3_i32_39 : i32
    %168 = arith.index_cast %167 : i32 to index
    %169 = memref.load %arg3[%168] : memref<44xf32, #tpu.memory_space<smem>>
    %170 = vector.broadcast %157 : f32 to vector<16x128xf32>
    %171 = arith.subf %20, %170 : vector<16x128xf32>
    %172 = vector.broadcast %161 : f32 to vector<16x128xf32>
    %173 = arith.subf %16, %172 : vector<16x128xf32>
    %174 = arith.mulf %171, %171 : vector<16x128xf32>
    %175 = arith.mulf %173, %173 : vector<16x128xf32>
    %176 = arith.addf %174, %175 : vector<16x128xf32>
    %cst_40 = arith.constant 9.99999971E-10 : f32
    %177 = vector.broadcast %cst_40 : f32 to vector<16x128xf32>
    %178 = arith.addf %176, %177 : vector<16x128xf32>
    %179 = math.log %178 : vector<16x128xf32>
    %180 = arith.mulf %176, %179 : vector<16x128xf32>
    %181 = vector.broadcast %165 : f32 to vector<16x128xf32>
    %182 = arith.mulf %181, %180 : vector<16x128xf32>
    %183 = arith.addf %151, %182 : vector<16x128xf32>
    %184 = vector.broadcast %169 : f32 to vector<16x128xf32>
    %185 = arith.mulf %184, %180 : vector<16x128xf32>
    %186 = arith.addf %154, %185 : vector<16x128xf32>
    %c0 = arith.constant 0 : index
    %c0_41 = arith.constant 0 : index
    %c0_42 = arith.constant 0 : index
    %c0_43 = arith.constant 0 : index
    %187 = vector.load %arg4[%c0, %c0_41, %c0_42, %c0_43] : memref<1x2x16x128xf32, #tpu.memory_space<vmem>>, vector<1x1x16x128xf32>
    %188 = vector.shape_cast %187 : vector<1x1x16x128xf32> to vector<16x128xf32>
    %189 = vector.shape_cast %183 : vector<16x128xf32> to vector<1x1x16x128xf32>
    tpu.vector_store %arg4[%c0, %c0_41, %c0_42, %c0_43], %189 {strides = array<i32>} : memref<1x2x16x128xf32, #tpu.memory_space<vmem>>, vector<1x1x16x128xf32>,
    %c0_44 = arith.constant 0 : index
    %c1 = arith.constant 1 : index
    %c0_45 = arith.constant 0 : index
    %c0_46 = arith.constant 0 : index
    %190 = vector.load %arg4[%c0_44, %c1, %c0_45, %c0_46] : memref<1x2x16x128xf32, #tpu.memory_space<vmem>>, vector<1x1x16x128xf32>
    %191 = vector.shape_cast %190 : vector<1x1x16x128xf32> to vector<16x128xf32>
    %192 = vector.shape_cast %186 : vector<16x128xf32> to vector<1x1x16x128xf32>
    tpu.vector_store %arg4[%c0_44, %c1, %c0_45, %c0_46], %192 {strides = array<i32>} : memref<1x2x16x128xf32, #tpu.memory_space<vmem>>, vector<1x1x16x128xf32>,
    return
  }
  func.func @transform_0(%arg0: i32, %arg1: i32, %arg2: i32) -> i32 {
    %c0_i32 = arith.constant 0 : i32
    %c0_i32_0 = arith.constant 0 : i32
    return %c0_i32 : i32
  }
  func.func @transform_1(%arg0: i32, %arg1: i32, %arg2: i32) -> (i32, i32, i32, i32) {
    %c0_i32 = arith.constant 0 : i32
    %c0_i32_0 = arith.constant 0 : i32
    return %arg0, %c0_i32, %arg1, %arg2 : i32, i32, i32, i32
  }
}

</mosaic_0001>

<bundles_post_ra>
// kernel: custom-call.8
= control target key start
LH: loop header
LB: loop body
LE: loop exit
PB: predicated region body
PF: predicated region fallthrough
CT: control target
= control target key end

     0   :  { %5 = vsyncpa [#allocation4], 0  ;;  %s889_s0 = inlined_call_operand.vmem [shape: f32[2,7,7], index: 0, kind: input, shape index: {}]   ;;  %s890_s1 = inlined_call_operand.vmem [shape: f32[2,7,7], index: 1, kind: output, shape index: {0}]   ;;  %s891_s2 = inlined_call_operand.hbm [shape: s32[2,7], index: 2, kind: output, shape index: {1}]   ;;  %s892_s3 = inlined_call_operand.vmem [shape: s32[2,7], index: 3, kind: output, shape index: {2}]  }
   0x1   :  { %7 = vsyncpa [#allocation4 + $0x1], 0  ;;  %s707_s12 = smov 0   ;;  %s709_s13 = smov 0  }
   0x2   :  { %s711_s14 = smov 0   ;;  %s713_s15 = smov 0  }
   0x3 LB: > { %s728_s16 = sadd.s32 4294967295, %s679_s15   ;;  %s542_s17 = sadd.s32 4294967294, %s679_s15   ;;  %s679_s15 = sphi %s713_s15, %s900_s15   ;;  %s675_s14 = sphi %s711_s14, %s899_s14   ;;  %s671_s13 = sphi %s709_s13, %s898_s13   ;;  %s667_s12 = sphi %s707_s12, %s897_s12  }
   0x4   : > { %s732_s18 = sadd.s32 1, %s679_s15   ;;  %s17_s19 = sshrl.u32 %s679_s15, 3 }
   0x5   : > { %s18_s20 = sshrl.u32 %s732_s18, 3  ;;  %s22_s21 = sadd.s32 1, %s675_s14 }
   0x6   : > { %s19_s22 = ssub.s32 %s17_s19, %s18_s20  ;;  %p32_p0 = scmp.ne.s32.totalorder %s675_s14, %s671_s13 }
   0x7   : > { %p20_p1 = scmp.eq.s32.totalorder %s19_s22, 0  ;;  %p33_p2 = scmp.eq.s32.totalorder %s728_s16, 1 }
   0x8   : > { %p38_p3 = scmp.ne.s32.totalorder %s671_s13, %s667_s12  ;;  %p39_p4 = scmp.eq.s32.totalorder %s542_s17, 1 }
   0x9   : > { %s743_s23 = scalar_select %p20_p1, %s675_s14, %s22_s21  }
   0xa   : > { %p745_p5 = por %p33_p2, %p32_p0  ;;  %p749_p6 = por %p39_p4, %p38_p3 }
   0xb   : > { %p544_p7 = scmp.ge.s32.totalorder %s679_s15, 2 }
   0xc   : > { %s85_s26 = sand.u32 (!%p544_p7), 1, %s679_s15   ;;  %s546_s27 = sshll.u32 (!%p544_p7), %s679_s15, 3 }
   0xd   : > { %83 = sbr.rel (%p544_p7) target bundleno = 20 (0x14), region = 16  ;;  %s545_s28 = sshll.u32 (!%p544_p7), %s85_s26, 3 }
   0xe   : > { %s89_s4 = scalar_lea.vmem (!%p544_p7), %s889_s0, %s546_s27  ;;  %s87_s5 = scalar_lea.vmem (!%p544_p7), [#allocation0], %s545_s28 }
   0xf   : > { %v117_v0 = vld [vmem:[%s89_s4] sm:$0xff] (!%p544_p7) }
  0x10   : > { %118 = vst [vmem:[%s87_s5] sm:$0xff] (!%p544_p7), %v117_v0 }
  0x14 PF: > { %p547_p8 = scmp.ge.s32.totalorder %s679_s15, 1  ;;  %p123_p9 = scmp.lt.s32.totalorder %s679_s15, 3 }
  0x16   : > { %p124_p10 = pnand %p547_p8, %p123_p9 }
  0x18   : > { %127 = sbr.rel (%p124_p10) target bundleno = 441 (0x1b9), region = 54 }
  0x1f   : > { %s130_s6 = sand.u32 1, %s728_s16   ;;  %s145_s7 = sand.u32 1, %s671_s13   ;;  %v163_v1 = vlaneseq  ;;  %v685_v4 = vmov 0  }
  0x20   : > { %s548_s8 = sshll.u32 %s130_s6, 3  ;;  %s767_s9 = sshll.u32 %s145_s7, 1 }
  0x21   : > { %v770_v2 = vshrl.u32 %v163_v1, 7  ;;  %s132_s10 = scalar_lea.vmem [#allocation0], %s548_s8  ;;  %s772_s11 = scalar_lea.vmem [#allocation1], %s548_s8 }
  0x22   : > { %v156_v3 = vld [vmem:[%s132_s10] sm:$0xff]  ;;  %s158_s17 = sand.u32 7, %s728_s16   ;;  %s147_s20 = scalar_lea.vmem [#allocation3], %s767_s9 }
  0x23   : > { %157 = vst [vmem:[%s772_s11] sm:$0xff] %v156_v3  ;;  %167 = vst [vmem:[#allocation7] sm:$0xff] %v770_v2  ;;  %s777_s19 = scalar_lea.vmem [#allocation2], %s158_s17  ;;  %s153_s21 = scalar_lea.vmem [#allocation6], %s767_s9 }
  0x24   : > { %162 = vst [vmem:[%s777_s19] sm:$0x1] %v685_v4  ;;  %s782_s22 = scalar_lea.vmem [#allocation5], %s158_s17  ;;  %s784_s26 = smov 0  }
  0x25 LB: >> { %vm183_vm0 = vcmp.lt.s32.totalorder %v770_v2, 7  ;;  %v792_v7 = vstv %s683_s26  ;;  %s224_s27 = ssub.s32 128, %s683_s26  ;;  %v230_v37 = vand.u32 127, %v163_v1  ;;  %s236_s28 = scalar_lea.vmem %s772_s11, %s683_s26 [#allocation1]  ;;  %s683_s26 = sphi %s784_s26, %s173_s26  }
  0x26   : >> { %vm182_vm1 = vcmp.ge.s32.totalorder %v770_v2, %v792_v7  ;;  %s242_s30 = scalar_lea.vmem [#allocation7], %s683_s26  ;;  %vm262_vm15 = vcmp.gt.s32.totalorder %v770_v2, %v792_v7  ;;  %s173_s26 = sadd.s32 1, %s683_s26  }
  0x27   : >> { %vm184_vm3 = vmand %vm182_vm1, %vm183_vm0  ;;  %vm254_vm12 = vcmp.gt.s32.totalorder %v230_v37, %v792_v7  ;;  %vm231_vm13 = vcmp.eq.s32.totalorder %v230_v37, %v792_v7  ;;  %p170_p11 = scmp.ge.s32.totalorder %s173_s26, 7  }
  0x28   : >> { %vm266_vm1 = vmand %vm262_vm15, %vm231_vm13  ;;  %s893_s6 = sshrl.u32 (%p170_p11), %s728_s16, 3  ;;  %s556_s8 = sshll.u32 (%p170_p11), %s728_s16, 3 }
  0x29   : > { %s557_s10 = sshll.u32 (%p170_p11), %s893_s6, 5  ;;  %s686_s6 = smov (%p170_p11), [#allocation3]  }
  0x2a   : >> { %v178_v5 = vld [vmem:[%s772_s11] sm:$0xff]  ;;  %v238_v40 = vld [vmem:[%s236_s28] ss:$0 sm:$0xff]  ;;  %s617_s17 = sshll.u32 (%p170_p11), %s686_s6, 4  ;;  %s618_s17 = int_to_ptr.vmem [resolvable:$false] %s617_s17 }
  0x2b   : >> { %v179_v6 = vand.u32 2147483647, %v178_v5  ;;  %v233_v39 = vld [vmem:[%s777_s19] ss:$0 sm:$0xff] }
  0x2c   : >> { %v244_v41 = vld [vmem:[%s242_s30] ss:$0 sm:$0xff] }
  0x2d   : >> { %vm552_vm2 = vcmp.gt.f32.partialorder %v179_v6, -inf }
  0x2e   : >> { %vm186_vm4 = vmand %vm184_vm3, %vm552_vm2 }
  0x2f   : >> { %v187_v8 = vsel %vm186_vm4, %v770_v2, %v792_v7  ;;  %v188_v9 = vsel %vm186_vm4, %v179_v6, -inf }
  0x30   : >> { %v189_v10 = vrot.slane %v188_v9, 1  ;;  %v190_v11 = vrot.slane %v187_v8, 1 }
  0x32   : >> { %vm191_vm5 = vcmp.ge.f32.partialorder %v189_v10, %v188_v9  ;;  %v194_v12 = vrot.slane %v189_v10, 1  ;;  %v195_v13 = vrot.slane %v190_v11, 1 }
  0x33   : >> { %v192_v14 = vsel %vm191_vm5, %v189_v10, %v188_v9  ;;  %v193_v15 = vsel %vm191_vm5, %v190_v11, %v187_v8 }
  0x34   : >> { %vm196_vm6 = vcmp.ge.f32.partialorder %v194_v12, %v192_v14  ;;  %v199_v16 = vrot.slane %v194_v12, 1  ;;  %v200_v17 = vrot.slane %v195_v13, 1 }
  0x35   : >> { %v197_v18 = vsel %vm196_vm6, %v194_v12, %v192_v14  ;;  %v198_v19 = vsel %vm196_vm6, %v195_v13, %v193_v15 }
  0x36   : >> { %vm201_vm7 = vcmp.ge.f32.partialorder %v199_v16, %v197_v18  ;;  %v204_v20 = vrot.slane %v199_v16, 1  ;;  %v205_v21 = vrot.slane %v200_v17, 1 }
  0x37   : >> { %v202_v22 = vsel %vm201_vm7, %v199_v16, %v197_v18  ;;  %v203_v23 = vsel %vm201_vm7, %v200_v17, %v198_v19 }
  0x38   : >> { %vm206_vm8 = vcmp.ge.f32.partialorder %v204_v20, %v202_v22  ;;  %v209_v24 = vrot.slane %v204_v20, 1  ;;  %v210_v25 = vrot.slane %v205_v21, 1 }
  0x39   : >> { %v207_v26 = vsel %vm206_vm8, %v204_v20, %v202_v22  ;;  %v208_v27 = vsel %vm206_vm8, %v205_v21, %v203_v23 }
  0x3a   : >> { %vm211_vm9 = vcmp.ge.f32.partialorder %v209_v24, %v207_v26  ;;  %v214_v28 = vrot.slane %v209_v24, 1  ;;  %v215_v29 = vrot.slane %v210_v25, 1 }
  0x3b   : >> { %v212_v30 = vsel %vm211_vm9, %v209_v24, %v207_v26  ;;  %v213_v31 = vsel %vm211_vm9, %v210_v25, %v208_v27 }
  0x3c   : >> { %vm216_vm10 = vcmp.ge.f32.partialorder %v214_v28, %v212_v30  ;;  %v219_v32 = vrot.slane %v214_v28, 1  ;;  %v220_v33 = vrot.slane %v215_v29, 1 }
  0x3d   : >> { %v217_v34 = vsel %vm216_vm10, %v214_v28, %v212_v30  ;;  %v218_v35 = vsel %vm216_vm10, %v215_v29, %v213_v31 }
  0x3e   : >> { %vm221_vm11 = vcmp.ge.f32.partialorder %v219_v32, %v217_v34 }
  0x3f   : >> { %v223_v36 = vsel %vm221_vm11, %v220_v33, %v218_v35 }
  0x40   : >> { %225 = vrot.lane.b32.xlu0 %v223_v36, %s224_s27 }
  0xb2   : >> { %v226_v38 = vpop.permute.xlu0 %225 }
  0xb3   : >> { %561 = vpush %v226_v38 }
  0xe4   : >> { %s562_s29 = spop %561 }
  0xe5   : >> { %v232_v42 = vstv %s562_s29  ;;  %s237_s4 = scalar_lea.vmem %s772_s11, %s562_s29 [#allocation1]  ;;  %s243_s5 = scalar_lea.vmem [#allocation7], %s562_s29 }
  0xe6   : >> { %v239_v43 = vld [vmem:[%s237_s4] ss:$0 sm:$0xff]  ;;  %v234_v45 = vsel %vm231_vm13, %v232_v42, %v233_v39  ;;  %s836_s29 = scalar_lea.hbm (%p170_p11), %s891_s2, %s557_s10 }
  0xe7   : >> { %v245_v44 = vld [vmem:[%s243_s5] ss:$0 sm:$0xff]  ;;  %240 = vst [vmem:[%s237_s4] sm:$0x1] %v238_v40  ;;  %vm248_vm14 = vcmp.ne.f32.partialorder %v239_v43, 0.0  ;;  %235 = vst [vmem:[%s777_s19] sm:$0x1] %v234_v45  ;;  %v255_v52 = vsel %vm254_vm12, %v239_v43, 0.0  ;;  %s348_s19 = scalar_lea.vmem (%p170_p11), %s890_s1, %s556_s8 }
  0xe8   : >> { %246 = vst [vmem:[%s243_s5] sm:$0x1] %v244_v41  ;;  %241 = vst [vmem:[%s236_s28] sm:$0x1] %v239_v43  ;;  %s339_s4 = scalar_lea.sflag (%p170_p11), [#allocation4], %s145_s7 }
  0xe9   : >> { %247 = vst [vmem:[%s242_s30] sm:$0x1] %v245_v44  ;;  %vm249_vm0 = vmand %vm231_vm13, %vm248_vm14  ;;  %s391_s30 = sshll.u32 (%p170_p11), %s147_s20, 4  ;;  %s392_s30 = int_to_ptr.vmem [resolvable:$true] %s391_s30 }
  0xea   : >> { %v250_v46 = vsel %vm249_vm0, %v239_v43, 1.0  ;;  %s613_s5 = scalar_lea.vmem (%p170_p11), %s392_s30, 32  ;;  %p620_p1 = scmp.lt.s32.totalorder (%p170_p11), %s392_s30, %s618_s17 }
  0xeb   : >> { %v263_v47 = vsel %vm262_vm15, %v250_v46, 1.0  ;;  %p614_p12 = scmp.ne.s32.totalorder (%p170_p11), %s392_s30, %s613_s5 }
  0xec   : >> { %611 = vrcp.f32 %v263_v47 }
  0xed   : > { %p615_p13 = pnand (%p170_p11), %p614_p12, %p745_p5 }
  0xee   : > { %v325_v57 = vld [vmem:[#allocation2] sm:$0x3] (%p170_p11) }
  0xef   : >> { %v259_v49 = vld [vmem:[%s772_s11] sm:$0xff]  ;;  %327 = vst [vmem:[%s147_s20] sm:$0x3] (%p170_p11), %v325_v57  ;;  %p616_p0 = pneg (%p170_p11), %p615_p13 }
  0xf0   : > { %v273_v56 = vld [vmem:[#allocation7] sm:$0xff] (%p170_p11) }
  0xf6   : >> { %v612_v48 = vpop.eup %611 }
  0xf7   : >> { %v265_v50 = vmul.f32 %v612_v48, %v259_v49 }
  0xf9   : >> { %v267_v51 = vsel %vm266_vm1, %v265_v50, 0.0 }
  0xfa   : >> { %268 = vadd.xlane.f32.xlu0 %v267_v51 }
 0x127   : > { %289 = vxpose.xlu0.b32.start.end [1/1] (short) (narrow) (%p170_p11), %v273_v56, 8 }
 0x186   : > { %172 = sbr.rel (!%p170_p11) target bundleno = 37 (0x25), region = 210 }
 0x187   : >> { %v269_v53 = vpop.xlane.xlu0 %268 }
 0x188   : >> { %v270_v54 = vmul.f32 %v269_v53, %v255_v52 }
 0x18a   : >> { %v271_v55 = vsub.f32 %v265_v50, %v270_v54 }
 0x18c   : >> { %272 = vst [vmem:[%s772_s11] sm:$0xff] %v271_v55 }
 0x193   : > { %v376_v58 = vld [vmem:[%s772_s11] sm:$0xff]  ;;  %s619_s11 = scalar_lea.vmem %s618_s17, 64 }
 0x194   : > { %377 = vst [vmem:[%s348_s19] sm:$0xff] %v376_v58  ;;  %p621_p2 = scmp.lt.s32.totalorder %s619_s11, %s613_s5 }
 0x196   : > { %p622_p3 = por %p621_p2, %p620_p1 }
 0x198   : > { %p623_p4 = pnand %p622_p3, %p616_p0 }
 0x19a   : > { %626 = shalt.err (!%p623_p4)
}
 0x19b   : > { %s627_s7 = scalar_lea.hbm %s836_s29, 32  ;;  %s631_s6 = scalar_lea.hbm %s891_s2, 32 }
 0x19c   : > { %p628_p8 = scmp.ne.s32.totalorder %s836_s29, %s627_s7  ;;  %p632_p11 = scmp.lt.u32.totalorder %s836_s29, %s891_s2 }
 0x19d   : > { %p633_p12 = scmp.lt.u32.totalorder %s631_s6, %s627_s7  ;;  %p635_p0 = scmp.lt.u32.totalorder %s627_s7, %s836_s29 }
 0x19e   : > { %p629_p9 = pnand %p628_p8, %p745_p5 }
 0x19f   : > { %p634_p13 = por %p633_p12, %p632_p11 }
 0x1a0   : > { %p630_p10 = pneg %p629_p9 }
 0x1a1   : > { %p636_p1 = por %p635_p0, %p634_p13 }
 0x1a3   : > { %p637_p2 = pnand %p636_p1, %p630_p10 }
 0x1a5   : > { %640 = shalt.err (!%p637_p2)
}
 0x1a6   : > { %563 = dma.vmem_to_hbm [thread:$0]  (%p745_p5), %s392_s30, 32, %s836_s29, %s339_s4  }
 0x1a7   : > { %v305_v59 = vpop.trf.xlu0  ;;  %s896_s19 = sshrl.u32 (%p745_p5), %s728_s16, 3 }
 0x1a8   : > { %321 = vst [vmem:[%s782_s22] sm:$0x1] %v305_v59  ;;  %s558_s27 = sshll.u32 (%p745_p5), %s896_s19, 1 }
 0x1a9   : > { %s400_s17 = scalar_lea.vmem (%p745_p5), %s892_s3, %s558_s27 }
 0x1aa   : > { %397 = sbr.rel (!%p745_p5) target bundleno = 441 (0x1b9), region = 104 }
 0x1af   : > { %v331_v60 = vld [vmem:[#allocation5] sm:$0x3] }
 0x1b0   : > { %333 = vst [vmem:[%s153_s21] sm:$0x3] %v331_v60 }
 0x1b7   : > { %v416_v61 = vld [vmem:[%s153_s21] sm:$0x3] }
 0x1b8   : > { %417 = vst [vmem:[%s400_s17] sm:$0x3] %v416_v61 }
 0x1b9 PF: > { %s444_s22 = sand.u32 1, %s667_s12   ;;  %p566_p5 = pnand %p544_p7, %p749_p6 }
 0x1ba   : > { %s445_s24 = scalar_lea.sflag [#allocation4], %s444_s22 }
 0x1bb   : > { %662 = dma.done.wait (!%p566_p5), %s445_s24, 32  }
 0x1bc   : > { %664 = vsyncadd (!%p566_p5), %s445_s24, 4294967264  ;;  %p10_p3 = scmp.ge.s32.totalorder %s732_s18, 4   ;;  %s897_s12 = smov %s671_s13 }
 0x1bd   : > { %s898_s13 = smov %s675_s14  ;;  %s899_s14 = smov %s743_s23 }
 0x1be   : > { %s900_s15 = smov %s732_s18  ;;  %12 = sbr.rel (!%p10_p3) target bundleno = 3 (0x3), region = 221 }
 0x1c5   :  { %457 = vsyncpa [#allocation4], 1 }
 0x1c6   :  { %459 = vsyncpa [#allocation4 + $0x1], 1 }

// kernel: custom-call.9
= control target key start
LH: loop header
LB: loop body
LE: loop exit
PB: predicated region body
PF: predicated region fallthrough
CT: control target
= control target key end

     0   :  { %s374_s6 = smov 0   ;;  %s376_s7 = smov 0   ;;  %s427_s0 = inlined_call_operand.vmem [shape: f32[2,1,7,7], index: 0, kind: input, shape index: {}]   ;;  %s428_s1 = inlined_call_operand.vmem [shape: f32[2,1,7,7], index: 1, kind: output, shape index: {}]  }
   0x1   :  { %s378_s8 = smov 0  }
   0x2 LB: > { %s300_s9 = sadd.s32 4294967295, %s361_s8   ;;  %s33_s10 = sadd.s32 1, %s357_s7  ;;  %s361_s8 = sphi %s378_s8, %s7_s8   ;;  %s357_s7 = sphi %s376_s7, %s430_s7   ;;  %s353_s6 = sphi %s374_s6, %s429_s6  }
   0x3   : > { %p35_p0 = scmp.ge.s32.totalorder %s33_s10, 2  ;;  %p302_p1 = scmp.ge.s32.totalorder %s361_s8, 2 }
   0x4   : > { %s49_s11 = sand.u32 (!%p302_p1), 1, %s361_s8   ;;  %s304_s12 = sshll.u32 (!%p302_p1), %s357_s7, 3 }
   0x5   : > { %s432_s10 = smov (%p35_p0, %s33_s10), 0  ;;  %47 = sbr.rel (%p302_p1) target bundleno = 12 (0xc), region = 16 }
   0x6   : > { %s303_s13 = sshll.u32 (!%p302_p1), %s49_s11, 3  ;;  %s56_s16 = scalar_lea.vmem (!%p302_p1), %s427_s0, %s304_s12 }
   0x7   : > { %v84_v0 = vld [vmem:[%s56_s16] sm:$0xff] (!%p302_p1)  ;;  %s51_s17 = scalar_lea.vmem (!%p302_p1), [#allocation0], %s303_s13 }
   0x8   : > { %85 = vst [vmem:[%s51_s17] sm:$0xff] (!%p302_p1), %v84_v0 }
   0xc PF: > { %p305_p2 = scmp.ge.s32.totalorder %s361_s8, 1  ;;  %p90_p3 = scmp.lt.s32.totalorder %s361_s8, 3 }
   0xe   : > { %p91_p4 = pnand %p305_p2, %p90_p3 }
  0x10   : > { %94 = sbr.rel (%p91_p4) target bundleno = 1068 (0x42c), region = 54 }
  0x17   : > { %s97_s18 = sand.u32 1, %s300_s9   ;;  %v108_v1 = vlaneseq  ;;  %v363_v10 = vmov -1.0   ;;  %s309_s21 = sshll.u32 %s353_s6, 3 }
  0x18   : > { %s306_s19 = sshll.u32 %s97_s18, 3  ;;  %s208_s24 = scalar_lea.vmem %s428_s1, %s309_s21 }
  0x19   : > { %v401_v2 = vand.u32 127, %v108_v1  ;;  %v112_v3 = vshrl.u32 %v108_v1, 7  ;;  %s99_s20 = scalar_lea.vmem [#allocation0], %s306_s19 }
  0x1a   : > { %v115_v4 = vld [vmem:[%s99_s20] sm:$0xff] }
  0x1b   : > { %vm110_vm0 = vcmp.lt.s32.totalorder %v401_v2, 7  ;;  %vm114_vm1 = vcmp.eq.s32.totalorder %v112_v3, %v401_v2  ;;  %vm119_vm2 = vcmp.le.s32.totalorder %v112_v3, %v401_v2  ;;  %vm133_vm4 = vcmp.eq.s32.totalorder %v401_v2, 6 }
  0x1c   : > { %v116_v5 = vsel %vm114_vm1, %v115_v4, 0.0  ;;  %vm120_vm3 = vmand %vm119_vm2, %vm110_vm0  ;;  %vm130_vm5 = vcmp.eq.s32.totalorder %v401_v2, %v112_v3  ;;  %v134_v11 = vsel %vm133_vm4, 1.0, %v363_v10  ;;  %vm141_vm6 = vcmp.eq.s32.totalorder %v401_v2, 5 }
  0x1d   : > { %v121_v6 = vsel %vm120_vm3, %v115_v4, 0.0  ;;  %117 = vadd.xlane.f32.xlu0 %v116_v5  ;;  %v135_v12 = vsel %vm130_vm5, %v134_v11, 0.0  ;;  %vm151_vm7 = vcmp.eq.s32.totalorder %v401_v2, 4  ;;  %vm161_vm8 = vcmp.eq.s32.totalorder %v401_v2, 3 }
  0x1e   : > { %vm171_vm9 = vcmp.eq.s32.totalorder %v401_v2, 2  ;;  %vm181_vm10 = vcmp.eq.s32.totalorder %v401_v2, 1  ;;  %vm190_vm11 = vcmp.eq.s32.totalorder %v401_v2, 0 }
  0xaa   : > { %v118_v7 = vpop.xlane.xlu0 %117 }
  0xab   : > { %337 = vrcp.f32 %v118_v7  ;;  %vm197_vm12 = vweird.f32 %v118_v7 }
  0xb5   : > { %v338_v8 = vpop.eup %337 }
  0xb6   : > { %v123_v9 = vmul.f32 %v338_v8, %v121_v6 }
  0xb8   : > { %124 = vst [vmem:[#allocation2] sm:$0xff] %v123_v9 }
  0xbf   : > { %v137_v13 = vld [vmem:[#allocation2 + $0x5] ss:$0 sm:$0xff]  ;;  %v147_v16 = vld [vmem:[#allocation2 + $0x4] ss:$0 sm:$0xff]  ;;  %v157_v21 = vld [vmem:[#allocation2 + $0x3] ss:$0 sm:$0xff] }
  0xc0   : > { %v138_v14 = vxor.u32 2147483648, %v137_v13  ;;  %v148_v18 = vxor.u32 2147483648, %v147_v16  ;;  %v158_v23 = vxor.u32 2147483648, %v157_v21  ;;  %v167_v26 = vld [vmem:[#allocation2 + $0x2] ss:$0 sm:$0xff] }
  0xc1   : > { %v168_v28 = vxor.u32 2147483648, %v167_v26  ;;  %v177_v31 = vld [vmem:[#allocation2 + $0x1] ss:$0 sm:$0xff]  ;;  %v186_v36 = vld [vmem:[#allocation2] ss:$0 sm:$0xff] }
  0xc2   : > { %v142_v15 = vmul.f32 %v138_v14, %v135_v12  ;;  %v178_v33 = vxor.u32 2147483648, %v177_v31  ;;  %v187_v38 = vxor.u32 2147483648, %v186_v36 }
  0xc4   : > { %143 = vadd.xlane.f32.xlu0 %v142_v15 }
 0x151   : > { %v144_v17 = vpop.xlane.xlu0 %143 }
 0x152   : > { %v145_v19 = vsel %vm141_vm6, %v144_v17, %v135_v12 }
 0x153   : > { %v152_v20 = vmul.f32 %v148_v18, %v145_v19 }
 0x155   : > { %153 = vadd.xlane.f32.xlu1 %v152_v20 }
 0x1e2   : > { %v154_v22 = vpop.xlane.xlu1 %153 }
 0x1e3   : > { %v155_v24 = vsel %vm151_vm7, %v154_v22, %v145_v19 }
 0x1e4   : > { %v162_v25 = vmul.f32 %v158_v23, %v155_v24 }
 0x1e6   : > { %163 = vadd.xlane.f32.xlu1 %v162_v25 }
 0x273   : > { %v164_v27 = vpop.xlane.xlu1 %163 }
 0x274   : > { %v165_v29 = vsel %vm161_vm8, %v164_v27, %v155_v24 }
 0x275   : > { %v172_v30 = vmul.f32 %v168_v28, %v165_v29 }
 0x277   : > { %173 = vadd.xlane.f32.xlu0 %v172_v30 }
 0x304   : > { %v174_v32 = vpop.xlane.xlu0 %173 }
 0x305   : > { %v175_v34 = vsel %vm171_vm9, %v174_v32, %v165_v29 }
 0x306   : > { %v182_v35 = vmul.f32 %v178_v33, %v175_v34 }
 0x308   : > { %183 = vadd.xlane.f32.xlu1 %v182_v35 }
 0x395   : > { %v184_v37 = vpop.xlane.xlu1 %183 }
 0x396   : > { %v185_v39 = vsel %vm181_vm10, %v184_v37, %v175_v34 }
 0x397   : > { %v191_v40 = vmul.f32 %v187_v38, %v185_v39 }
 0x399   : > { %192 = vadd.xlane.f32.xlu0 %v191_v40 }
 0x426   : > { %v193_v41 = vpop.xlane.xlu0 %192 }
 0x427   : > { %v194_v42 = vsel %vm190_vm11, %v193_v41, %v185_v39 }
 0x428   : > { %v196_v43 = vmul.f32 %v338_v8, %v194_v42 }
 0x42a   : > { %v198_v44 = vsel %vm197_vm12, %v194_v42, %v196_v43 }
 0x42b   : > { %237 = vst [vmem:[%s208_s24] sm:$0xff] %v198_v44 }
 0x42c PF: > { %s7_s8 = sadd.s32 1, %s361_s8   ;;  %s429_s6 = smov %s357_s7 }
 0x42d   : > { %p4_p5 = scmp.ge.s32.totalorder %s7_s8, 4   ;;  %s430_s7 = smov %s432_s10 }
 0x42f   :  { %6 = sbr.rel (!%p4_p5) target bundleno = 2 (0x2), region = 123 }

// kernel: custom-call.10
= control target key start
LH: loop header
LB: loop body
LE: loop exit
PB: predicated region body
PF: predicated region fallthrough
CT: control target
= control target key end

     0   :  { %s375_s6 = smov 0   ;;  %s377_s7 = smov 0   ;;  %s428_s0 = inlined_call_operand.vmem [shape: f32[2,1,7,7], index: 0, kind: input, shape index: {}]   ;;  %s429_s1 = inlined_call_operand.vmem [shape: f32[2,1,7,7], index: 1, kind: output, shape index: {}]  }
   0x1   :  { %s379_s8 = smov 0  }
   0x2 LB: > { %s301_s9 = sadd.s32 4294967295, %s362_s8   ;;  %s33_s10 = sadd.s32 1, %s358_s7  ;;  %s362_s8 = sphi %s379_s8, %s7_s8   ;;  %s358_s7 = sphi %s377_s7, %s431_s7   ;;  %s354_s6 = sphi %s375_s6, %s430_s6  }
   0x3   : > { %p35_p0 = scmp.ge.s32.totalorder %s33_s10, 2  ;;  %p303_p1 = scmp.ge.s32.totalorder %s362_s8, 2 }
   0x4   : > { %s49_s11 = sand.u32 (!%p303_p1), 1, %s362_s8   ;;  %s305_s12 = sshll.u32 (!%p303_p1), %s358_s7, 3 }
   0x5   : > { %s433_s10 = smov (%p35_p0, %s33_s10), 0  ;;  %47 = sbr.rel (%p303_p1) target bundleno = 12 (0xc), region = 16 }
   0x6   : > { %s304_s13 = sshll.u32 (!%p303_p1), %s49_s11, 3  ;;  %s56_s16 = scalar_lea.vmem (!%p303_p1), %s428_s0, %s305_s12 }
   0x7   : > { %v84_v0 = vld [vmem:[%s56_s16] sm:$0xff] (!%p303_p1)  ;;  %s51_s17 = scalar_lea.vmem (!%p303_p1), [#allocation0], %s304_s13 }
   0x8   : > { %85 = vst [vmem:[%s51_s17] sm:$0xff] (!%p303_p1), %v84_v0 }
   0xc PF: > { %p306_p2 = scmp.ge.s32.totalorder %s362_s8, 1  ;;  %p90_p3 = scmp.lt.s32.totalorder %s362_s8, 3 }
   0xe   : > { %p91_p4 = pnand %p306_p2, %p90_p3 }
  0x10   : > { %94 = sbr.rel (%p91_p4) target bundleno = 1068 (0x42c), region = 54 }
  0x17   : > { %s97_s18 = sand.u32 1, %s301_s9   ;;  %v108_v1 = vlaneseq  ;;  %v364_v10 = vmov -1.0   ;;  %s310_s21 = sshll.u32 %s354_s6, 3 }
  0x18   : > { %s307_s19 = sshll.u32 %s97_s18, 3  ;;  %s209_s24 = scalar_lea.vmem %s429_s1, %s310_s21 }
  0x19   : > { %v402_v2 = vand.u32 127, %v108_v1  ;;  %v112_v3 = vshrl.u32 %v108_v1, 7  ;;  %s99_s20 = scalar_lea.vmem [#allocation0], %s307_s19 }
  0x1a   : > { %v115_v4 = vld [vmem:[%s99_s20] sm:$0xff] }
  0x1b   : > { %vm110_vm0 = vcmp.lt.s32.totalorder %v402_v2, 7  ;;  %vm114_vm1 = vcmp.eq.s32.totalorder %v112_v3, %v402_v2  ;;  %vm119_vm2 = vcmp.ge.s32.totalorder %v112_v3, %v402_v2  ;;  %vm133_vm4 = vcmp.eq.s32.totalorder %v402_v2, 0 }
  0x1c   : > { %v116_v5 = vsel %vm114_vm1, %v115_v4, 0.0  ;;  %vm120_vm3 = vmand %vm119_vm2, %vm110_vm0  ;;  %vm130_vm5 = vcmp.eq.s32.totalorder %v402_v2, %v112_v3  ;;  %v134_v11 = vsel %vm133_vm4, 1.0, %v364_v10  ;;  %vm141_vm6 = vcmp.eq.s32.totalorder %v402_v2, 1 }
  0x1d   : > { %v121_v6 = vsel %vm120_vm3, %v115_v4, 0.0  ;;  %117 = vadd.xlane.f32.xlu0 %v116_v5  ;;  %v135_v12 = vsel %vm130_vm5, %v134_v11, 0.0  ;;  %vm151_vm7 = vcmp.eq.s32.totalorder %v402_v2, 2  ;;  %vm161_vm8 = vcmp.eq.s32.totalorder %v402_v2, 3 }
  0x1e   : > { %vm171_vm9 = vcmp.eq.s32.totalorder %v402_v2, 4  ;;  %vm181_vm10 = vcmp.eq.s32.totalorder %v402_v2, 5  ;;  %vm191_vm11 = vcmp.eq.s32.totalorder %v402_v2, 6 }
  0xaa   : > { %v118_v7 = vpop.xlane.xlu0 %117 }
  0xab   : > { %338 = vrcp.f32 %v118_v7  ;;  %vm198_vm12 = vweird.f32 %v118_v7 }
  0xb5   : > { %v339_v8 = vpop.eup %338 }
  0xb6   : > { %v123_v9 = vmul.f32 %v339_v8, %v121_v6 }
  0xb8   : > { %124 = vst [vmem:[#allocation2] sm:$0xff] %v123_v9 }
  0xbf   : > { %v137_v13 = vld [vmem:[#allocation2 + $0x1] ss:$0 sm:$0xff]  ;;  %v147_v16 = vld [vmem:[#allocation2 + $0x2] ss:$0 sm:$0xff]  ;;  %v157_v21 = vld [vmem:[#allocation2 + $0x3] ss:$0 sm:$0xff] }
  0xc0   : > { %v138_v14 = vxor.u32 2147483648, %v137_v13  ;;  %v148_v18 = vxor.u32 2147483648, %v147_v16  ;;  %v158_v23 = vxor.u32 2147483648, %v157_v21  ;;  %v167_v26 = vld [vmem:[#allocation2 + $0x4] ss:$0 sm:$0xff] }
  0xc1   : > { %v168_v28 = vxor.u32 2147483648, %v167_v26  ;;  %v177_v31 = vld [vmem:[#allocation2 + $0x5] ss:$0 sm:$0xff]  ;;  %v187_v36 = vld [vmem:[#allocation2 + $0x6] ss:$0 sm:$0xff] }
  0xc2   : > { %v142_v15 = vmul.f32 %v138_v14, %v135_v12  ;;  %v178_v33 = vxor.u32 2147483648, %v177_v31  ;;  %v188_v38 = vxor.u32 2147483648, %v187_v36 }
  0xc4   : > { %143 = vadd.xlane.f32.xlu0 %v142_v15 }
 0x151   : > { %v144_v17 = vpop.xlane.xlu0 %143 }
 0x152   : > { %v145_v19 = vsel %vm141_vm6, %v144_v17, %v135_v12 }
 0x153   : > { %v152_v20 = vmul.f32 %v148_v18, %v145_v19 }
 0x155   : > { %153 = vadd.xlane.f32.xlu1 %v152_v20 }
 0x1e2   : > { %v154_v22 = vpop.xlane.xlu1 %153 }
 0x1e3   : > { %v155_v24 = vsel %vm151_vm7, %v154_v22, %v145_v19 }
 0x1e4   : > { %v162_v25 = vmul.f32 %v158_v23, %v155_v24 }
 0x1e6   : > { %163 = vadd.xlane.f32.xlu1 %v162_v25 }
 0x273   : > { %v164_v27 = vpop.xlane.xlu1 %163 }
 0x274   : > { %v165_v29 = vsel %vm161_vm8, %v164_v27, %v155_v24 }
 0x275   : > { %v172_v30 = vmul.f32 %v168_v28, %v165_v29 }
 0x277   : > { %173 = vadd.xlane.f32.xlu0 %v172_v30 }
 0x304   : > { %v174_v32 = vpop.xlane.xlu0 %173 }
 0x305   : > { %v175_v34 = vsel %vm171_vm9, %v174_v32, %v165_v29 }
 0x306   : > { %v182_v35 = vmul.f32 %v178_v33, %v175_v34 }
 0x308   : > { %183 = vadd.xlane.f32.xlu1 %v182_v35 }
 0x395   : > { %v184_v37 = vpop.xlane.xlu1 %183 }
 0x396   : > { %v185_v39 = vsel %vm181_vm10, %v184_v37, %v175_v34 }
 0x397   : > { %v192_v40 = vmul.f32 %v188_v38, %v185_v39 }
 0x399   : > { %193 = vadd.xlane.f32.xlu0 %v192_v40 }
 0x426   : > { %v194_v41 = vpop.xlane.xlu0 %193 }
 0x427   : > { %v195_v42 = vsel %vm191_vm11, %v194_v41, %v185_v39 }
 0x428   : > { %v197_v43 = vmul.f32 %v339_v8, %v195_v42 }
 0x42a   : > { %v199_v44 = vsel %vm198_vm12, %v195_v42, %v197_v43 }
 0x42b   : > { %238 = vst [vmem:[%s209_s24] sm:$0xff] %v199_v44 }
 0x42c PF: > { %s7_s8 = sadd.s32 1, %s362_s8   ;;  %s430_s6 = smov %s358_s7 }
 0x42d   : > { %p4_p5 = scmp.ge.s32.totalorder %s7_s8, 4   ;;  %s431_s7 = smov %s433_s10 }
 0x42f   :  { %6 = sbr.rel (!%p4_p5) target bundleno = 2 (0x2), region = 124 }

// kernel: tps_forward.1
= control target key start
LH: loop header
LB: loop body
LE: loop exit
PB: predicated region body
PF: predicated region fallthrough
CT: control target
= control target key end

     0   :  { %6 = vsyncpa [#allocation3], 0  ;;  %s564_s6 = smov 0   ;;  %s566_s7 = smov 0   ;;  %s757_s0 = inlined_call_operand.vmem [shape: f32[44], index: 0, kind: input, shape index: {}]   ;;  %s758_s1 = inlined_call_operand.vmem [shape: f32[2,2,16,128], index: 1, kind: output, shape index: {}]  }
   0x1   :  { %s568_s8 = smov 0  }
   0x2 LB: > { %s446_s9 = sadd.s32 4294967295, %s551_s8   ;;  %s31_s10 = sadd.s32 1, %s547_s7  ;;  %s551_s8 = sphi %s568_s8, %s12_s8   ;;  %s547_s7 = sphi %s566_s7, %s762_s7   ;;  %s543_s6 = sphi %s564_s6, %s761_s6  }
   0x3   : > { %p33_p0 = scmp.ge.s32.totalorder %s31_s10, 2  ;;  %p448_p1 = scmp.ge.s32.totalorder %s551_s8, 1 }
   0x4   : > { %p87_p2 = scmp.lt.s32.totalorder %s551_s8, 3  ;;  %p589_p4 = scmp.eq.s32.totalorder %s446_s9, 0 }
   0x5   : > { %s764_s10 = smov (%p33_p0, %s31_s10), 0  ;;  %s100_s15 = sshll.u32 %s757_s0, 4  ;;  %s101_s15 = int_to_ptr.vmem [resolvable:$true] %s100_s15 }
   0x6   : > { %p585_p3 = pnand %p448_p1, %p87_p2  ;;  %s510_s16 = scalar_lea.vmem %s101_s15, 16 }
   0x7   : > { %p511_p7 = scmp.ne.s32.totalorder %s101_s15, %s510_s16  ;;  %p518_p11 = scmp.lt.s32.totalorder %s101_s15, %s101_s15 }
   0x8   : > { %p463_p5 = pneg %p585_p3  ;;  %p519_p12 = scmp.lt.s32.totalorder %s510_s16, %s510_s16 }
   0xa   : > { %p464_p6 = pnand %p589_p4, %p463_p5  ;;  %p520_p13 = por %p519_p12, %p518_p11 }
   0xc   : > { %p512_p8 = pneg %p464_p6 }
   0xe   : > { %p513_p9 = pnand %p512_p8, %p511_p7 }
  0x10   : > { %p514_p10 = pneg %p513_p9 }
  0x12   : > { %p521_p0 = pnand %p520_p13, %p514_p10 }
  0x14   : > { %524 = shalt.err (!%p521_p0)
}
  0x15   : > { %s553_s17 = smov [#allocation2]   ;;  %113 = sbr.rel (%p585_p3) target bundleno = 82 (0x52), region = 24 }
  0x16   : > { %466 = dma.vmem_to_smem (!%p464_p6), %s101_s15, 16, %s553_s17, [#allocation3]  }
  0x1c   : > { %538 = dma.done.wait (%p589_p4), [#allocation3], 16  }
  0x1d   : > { %540 = vsyncadd (%p589_p4), [#allocation3], 4294967280 }
  0x1e   : > { %119 = sfence }
  0x1f   : > { %v150_v0 = vlaneseq  ;;  %s607_s18 = smul.u32 22, %s543_s6  ;;  %p137_p1 = scmp.lt.s32.totalorder %s543_s6, 1 }
  0x21   : > { %v151_v1 = vshrl.u32 %v150_v0, 7  ;;  %v156_v2 = vand.u32 127, %v150_v0  ;;  %s204_s19 = sld [smem:[#allocation2 + %s607_s18]]  ;;  %s205_s20 = sadd.s32 4, %s607_s18 }
  0x22   : > { %s206_s21 = sld [smem:[#allocation2 + %s205_s20]]  ;;  %s174_s22 = sadd.s32 16, %s607_s18 }
  0x23   : > { %v153_v3 = vcvt.s32.f32 %v151_v1  ;;  %v157_v4 = vcvt.s32.f32 %v156_v2  ;;  %v152_v5 = vadd.s32 8, %v151_v1  ;;  %s239_s23 = sadd.s32 1, %s607_s18  ;;  %s241_s25 = sadd.s32 5, %s607_s18 }
  0x24   : > { %s240_s24 = sld [smem:[#allocation2 + %s239_s23]]  ;;  %s176_s26 = sadd.s32 17, %s607_s18 }
  0x25   : > { %v171_v6 = vmul.f32 0.13333334, %v157_v4  ;;  %v154_v7 = vcvt.s32.f32 %v152_v5  ;;  %v166_v8 = vmul.f32 0.13333334, %v153_v3  ;;  %s242_s27 = sld [smem:[#allocation2 + %s241_s25]]  ;;  %s275_s29 = sadd.s32 2, %s607_s18 }
  0x26   : > { %s621_s28 = sld [smem:[#allocation2 + %s174_s22]]  ;;  %s277_s2 = sadd.s32 6, %s607_s18 }
  0x27   : > { %v167_v9 = vmul.f32 0.13333334, %v154_v7  ;;  %v611_v10 = vadd.f32 -1.0, %v171_v6  ;;  %v616_v11 = vadd.f32 -1.0, %v166_v8  ;;  %v211_v13 = vstv %s204_s19  ;;  %s276_s30 = sld [smem:[#allocation2 + %s275_s29]]  ;;  %s178_s5 = sadd.s32 18, %s607_s18 }
  0x28   : > { %s626_s3 = sld [smem:[#allocation2 + %s176_s26]]  ;;  %v213_v15 = vstv %s206_s21  ;;  %s311_s9 = sadd.s32 3, %s607_s18 }
  0x29   : > { %v619_v12 = vadd.f32 -1.0, %v167_v9  ;;  %v212_v14 = vsub.f32 %v611_v10, %v211_v13  ;;  %s628_s4 = sld [smem:[#allocation2 + %s277_s2]]  ;;  %v214_v16 = vsub.f32 %v616_v11, %v213_v15  ;;  %s313_s12 = sadd.s32 7, %s607_s18 }
  0x2a   : > { %v247_v19 = vstv %s240_s24  ;;  %s634_s11 = sld [smem:[#allocation2 + %s311_s9]]  ;;  %s180_s14 = sadd.s32 19, %s607_s18 }
  0x2b   : > { %v216_v17 = vmul.f32 %v212_v14, %v212_v14  ;;  %v215_v18 = vsub.f32 %v619_v12, %v213_v15  ;;  %v217_v20 = vmul.f32 %v214_v16, %v214_v16  ;;  %v248_v21 = vsub.f32 %v611_v10, %v247_v19  ;;  %s638_s13 = sld [smem:[#allocation2 + %s313_s12]]  ;;  %s182_s16 = sadd.s32 20, %s607_s18 }
  0x2c   : > { %v249_v22 = vstv %s242_s27  ;;  %s643_s15 = sld [smem:[#allocation2 + %s178_s5]]  ;;  %s184_s19 = sadd.s32 21, %s607_s18  ;;  %v188_v34 = vstv %s621_s28 }
  0x2d   : > { %v218_v23 = vmul.f32 %v215_v18, %v215_v18  ;;  %v250_v24 = vsub.f32 %v616_v11, %v249_v22  ;;  %v251_v25 = vsub.f32 %v619_v12, %v249_v22  ;;  %v645_v26 = vadd.f32 %v217_v20, %v216_v17  ;;  %s652_s17 = sld [smem:[#allocation2 + %s182_s16]]  ;;  %s207_s22 = sadd.s32 8, %s607_s18 }
  0x2e   : > { %v252_v27 = vmul.f32 %v248_v21, %v248_v21  ;;  %v283_v28 = vstv %s276_s30  ;;  %s659_s20 = sld [smem:[#allocation2 + %s180_s14]]  ;;  %v186_v45 = vstv %s626_s3  ;;  %s209_s23 = sadd.s32 12, %s607_s18 }
  0x2f   : > { %v647_v29 = vadd.f32 %v218_v23, %v216_v17  ;;  %v253_v30 = vmul.f32 %v250_v24, %v250_v24  ;;  %v284_v31 = vsub.f32 %v611_v10, %v283_v28  ;;  %v285_v32 = vstv %s628_s4  ;;  %s661_s21 = sld [smem:[#allocation2 + %s184_s19]]  ;;  %s243_s24 = sadd.s32 9, %s607_s18 }
  0x30   : > { %v254_v33 = vmul.f32 %v251_v25, %v251_v25  ;;  %v221_v35 = vadd.f32 1e-09, %v645_v26  ;;  %v286_v36 = vsub.f32 %v616_v11, %v285_v32  ;;  %v319_v40 = vstv %s634_s11  ;;  %s245_s25 = sadd.s32 13, %s607_s18  ;;  %s684_s26 = sld [smem:[#allocation2 + %s207_s22]] }
  0x31   : > { %v222_v37 = vadd.f32 1e-09, %v647_v29  ;;  %v663_v38 = vadd.f32 %v253_v30, %v252_v27  ;;  %v288_v39 = vmul.f32 %v284_v31, %v284_v31  ;;  %v320_v43 = vsub.f32 %v611_v10, %v319_v40  ;;  %s687_s27 = sld [smem:[#allocation2 + %s209_s23]]  ;;  %s279_s28 = sadd.s32 10, %s607_s18 }
  0x32   : > { %v666_v41 = vadd.f32 %v254_v33, %v252_v27  ;;  %494 = vlog2.f32 %v221_v35  ;;  %v289_v42 = vmul.f32 %v286_v36, %v286_v36  ;;  %v321_v44 = vstv %s638_s13  ;;  %s694_s29 = sld [smem:[#allocation2 + %s243_s24]]  ;;  %s281_s2 = sadd.s32 14, %s607_s18 }
  0x33   : > { %v257_v46 = vadd.f32 1e-09, %v663_v38  ;;  %v322_v47 = vsub.f32 %v616_v11, %v321_v44  ;;  %496 = vlog2.f32 %v222_v37  ;;  %v324_v49 = vmul.f32 %v320_v43, %v320_v43  ;;  %s700_s30 = sld [smem:[#allocation2 + %s245_s25]]  ;;  %s315_s4 = sadd.s32 11, %s607_s18 }
  0x34   : > { %v675_v48 = vadd.f32 %v289_v42, %v288_v39  ;;  %v258_v50 = vadd.f32 1e-09, %v666_v41  ;;  %v287_v51 = vsub.f32 %v619_v12, %v285_v32  ;;  %v323_v53 = vsub.f32 %v619_v12, %v321_v44  ;;  %s707_s3 = sld [smem:[#allocation2 + %s279_s28]]  ;;  %s317_s9 = sadd.s32 15, %s607_s18 }
  0x35   : > { %498 = vlog2.f32 %v257_v46  ;;  %v325_v52 = vmul.f32 %v322_v47, %v322_v47  ;;  %v195_v54 = vstv %s652_s17  ;;  %v187_v55 = vmul.f32 %v186_v45, %v611_v10  ;;  %s714_s5 = sld [smem:[#allocation2 + %s281_s2]]  ;;  %s766_s6 = smov (!%p137_p1, %s543_s6), 1 }
  0x36   : > { %v293_v56 = vadd.f32 1e-09, %v675_v48  ;;  %500 = vlog2.f32 %v258_v50  ;;  %v290_v57 = vmul.f32 %v287_v51, %v287_v51  ;;  %v190_v58 = vstv %s643_s15  ;;  %s719_s11 = sld [smem:[#allocation2 + %s315_s4]]  ;;  %s458_s12 = sshll.u32 %s766_s6, 5 }
  0x37   : > { %v691_v59 = vadd.f32 %v325_v52, %v324_v49  ;;  %v326_v60 = vmul.f32 %v323_v53, %v323_v53  ;;  %v196_v61 = vmul.f32 %v195_v54, %v611_v10  ;;  %v197_v63 = vstv %s659_s20  ;;  %s723_s18 = sld [smem:[#allocation2 + %s317_s9]]  ;;  %s147_s15 = scalar_lea.vmem %s758_s1, %s458_s12 }
  0x38   : > { %502 = vlog2.f32 %v293_v56  ;;  %v696_v62 = vadd.f32 %v290_v57, %v288_v39  ;;  %v199_v0 = vstv %s661_s21  ;;  %v189_v3 = vadd.f32 %v188_v34, %v187_v55 }
  0x39   : > { %v329_v1 = vadd.f32 1e-09, %v691_v59  ;;  %v703_v2 = vadd.f32 %v326_v60, %v324_v49  ;;  %v191_v4 = vmul.f32 %v190_v58, %v616_v11  ;;  %v192_v5 = vmul.f32 %v190_v58, %v619_v12 }
  0x3a   : > { %v294_v6 = vadd.f32 1e-09, %v696_v62  ;;  %v198_v8 = vadd.f32 %v197_v63, %v196_v61  ;;  %v200_v9 = vmul.f32 %v199_v0, %v616_v11  ;;  %v201_v15 = vmul.f32 %v199_v0, %v619_v12 }
  0x3b   : > { %504 = vlog2.f32 %v329_v1  ;;  %v330_v7 = vadd.f32 1e-09, %v703_v2  ;;  %v229_v16 = vstv %s684_s26  ;;  %v234_v18 = vstv %s687_s27 }
  0x3c   : > { %v495_v10 = vpop.eup %494  ;;  %506 = vlog2.f32 %v294_v6  ;;  %v193_v11 = vadd.f32 %v191_v4, %v189_v3  ;;  %v194_v21 = vadd.f32 %v192_v5, %v189_v3  ;;  %v202_v22 = vadd.f32 %v200_v9, %v198_v8 }
  0x3d   : > { %v497_v13 = vpop.eup %496  ;;  %v224_v14 = vmul.f32 0.6931472, %v495_v10  ;;  %508 = vlog2.f32 %v330_v7  ;;  %v265_v25 = vstv %s694_s29  ;;  %v270_v27 = vstv %s700_s30 }
  0x3e   : > { %v226_v17 = vmul.f32 0.6931472, %v497_v13  ;;  %v203_v32 = vadd.f32 %v201_v15, %v198_v8  ;;  %v301_v34 = vstv %s707_s3  ;;  %v306_v45 = vstv %s714_s5 }
  0x3f   : > { %v499_v19 = vpop.eup %498  ;;  %v227_v20 = vmul.f32 %v224_v14, %v645_v26  ;;  %v342_v60 = vstv %s723_s18 }
  0x40   : > { %v501_v23 = vpop.eup %500  ;;  %v260_v24 = vmul.f32 0.6931472, %v499_v19  ;;  %v228_v12 = vmul.f32 %v226_v17, %v647_v29 }
  0x41   : > { %v230_v28 = vmul.f32 %v229_v16, %v227_v20  ;;  %v262_v30 = vmul.f32 0.6931472, %v501_v23  ;;  %v235_v31 = vmul.f32 %v234_v18, %v227_v20 }
  0x42   : > { %v503_v26 = vpop.eup %502  ;;  %v263_v33 = vmul.f32 %v260_v24, %v663_v38  ;;  %v231_v35 = vmul.f32 %v229_v16, %v228_v12  ;;  %v236_v36 = vmul.f32 %v234_v18, %v228_v12 }
  0x43   : > { %v232_v37 = vadd.f32 %v230_v28, %v193_v11  ;;  %v296_v39 = vmul.f32 0.6931472, %v503_v26  ;;  %v264_v40 = vmul.f32 %v262_v30, %v666_v41  ;;  %v237_v42 = vadd.f32 %v235_v31, %v202_v22 }
  0x44   : > { %v266_v29 = vmul.f32 %v265_v25, %v263_v33  ;;  %v233_v43 = vadd.f32 %v231_v35, %v194_v21  ;;  %v271_v44 = vmul.f32 %v270_v27, %v263_v33  ;;  %v238_v49 = vadd.f32 %v236_v36, %v203_v32 }
  0x45   : > { %v505_v46 = vpop.eup %504  ;;  %v299_v38 = vmul.f32 %v296_v39, %v675_v48  ;;  %v267_v47 = vmul.f32 %v265_v25, %v264_v40  ;;  %v272_v50 = vmul.f32 %v270_v27, %v264_v40  ;;  %v337_v41 = vstv %s719_s11 }
  0x46   : > { %v507_v51 = vpop.eup %506  ;;  %v268_v52 = vadd.f32 %v266_v29, %v232_v37  ;;  %v332_v53 = vmul.f32 0.6931472, %v505_v46  ;;  %v273_v54 = vadd.f32 %v271_v44, %v237_v42 }
  0x47   : > { %v509_v55 = vpop.eup %508  ;;  %v302_v56 = vmul.f32 %v301_v34, %v299_v38  ;;  %v298_v57 = vmul.f32 0.6931472, %v507_v51  ;;  %v307_v58 = vmul.f32 %v306_v45, %v299_v38  ;;  %v269_v63 = vadd.f32 %v267_v47, %v233_v43 }
  0x48   : > { %v335_v61 = vmul.f32 %v332_v53, %v691_v59  ;;  %v334_v0 = vmul.f32 0.6931472, %v509_v55  ;;  %v274_v4 = vadd.f32 %v272_v50, %v238_v49 }
  0x49   : > { %v304_v1 = vadd.f32 %v302_v56, %v268_v52  ;;  %v300_v48 = vmul.f32 %v298_v57, %v696_v62  ;;  %v309_v3 = vadd.f32 %v307_v58, %v273_v54 }
  0x4a   : > { %v338_v5 = vmul.f32 %v337_v41, %v335_v61  ;;  %v336_v6 = vmul.f32 %v334_v0, %v703_v2  ;;  %v343_v7 = vmul.f32 %v342_v60, %v335_v61 }
  0x4b   : > { %v303_v8 = vmul.f32 %v301_v34, %v300_v48  ;;  %v308_v9 = vmul.f32 %v306_v45, %v300_v48 }
  0x4c   : > { %v340_v10 = vadd.f32 %v338_v5, %v304_v1  ;;  %v339_v13 = vmul.f32 %v337_v41, %v336_v6  ;;  %v345_v59 = vadd.f32 %v343_v7, %v309_v3  ;;  %v344_v14 = vmul.f32 %v342_v60, %v336_v6 }
  0x4d   : > { %v305_v15 = vadd.f32 %v303_v8, %v269_v63  ;;  %v310_v16 = vadd.f32 %v308_v9, %v274_v4 }
  0x4e   : > { %347 = vst [vmem:[%s147_s15] sm:$0xff] %v340_v10  ;;  %454 = vst [vmem:[%s147_s15 + $0x10] sm:$0xff] %v345_v59 }
  0x4f   : > { %v341_v62 = vadd.f32 %v339_v13, %v305_v15  ;;  %v346_v17 = vadd.f32 %v344_v14, %v310_v16 }
  0x51   : > { %348 = vst [vmem:[%s147_s15 + $0x8] sm:$0xff] %v341_v62  ;;  %455 = vst [vmem:[%s147_s15 + $0x18] sm:$0xff] %v346_v17 }
  0x52 PF: > { %s12_s8 = sadd.s32 1, %s551_s8   ;;  %s761_s6 = smov %s547_s7 }
  0x53   : > { %p9_p2 = scmp.ge.s32.totalorder %s12_s8, 4   ;;  %s762_s7 = smov %s764_s10 }
  0x55   :  { %11 = sbr.rel (!%p9_p2) target bundleno = 2 (0x2), region = 57 }
  0x5c   :  { %388 = vsyncpa [#allocation3], 1 }
  0x5d   :  { %390 = vsyncpa [#allocation3 + $0x1], 1 }

</bundles_post_ra>
